<compile_context>
chip_gen: v7x
topology: tpu7x:2x2x1
jax: 0.10.0
libtpu: 0.0.40
codegen_flags: <defaults>
</compile_context>

<pallas_src>
import jax
import jax.numpy as jnp
from jax.experimental import pallas as pl
from jax.experimental.pallas import tpu as pltpu


def _channel_attention_kernel(x_ref, w1_ref, w2_ref, o_ref, max_acc, sum_acc,
                              *, inv_n):
    n_idx = pl.program_id(1)

    # --- init accumulators at the first spatial tile of this batch element ---
    @pl.when(n_idx == 0)
    def _():
        max_acc[...] = jnp.full_like(max_acc, -jnp.inf)
        sum_acc[...] = jnp.zeros_like(sum_acc)

    # --- accumulate spatial max / sum over this (C, TN) tile (lane reduce) ---
    x = x_ref[0].astype(jnp.float32)                                  # (C, TN)
    max_acc[...] = jnp.maximum(max_acc[...],
                               jnp.max(x, axis=-1, keepdims=True))    # (C, 1)
    sum_acc[...] = sum_acc[...] + jnp.sum(x, axis=-1, keepdims=True)  # (C, 1)

    # --- last spatial tile: shared-MLP on pooled features + sigmoid ---------
    @pl.when(n_idx == pl.num_programs(1) - 1)
    def _():
        maxv = max_acc[...]                       # (C, 1)
        avgv = sum_acc[...] * inv_n               # (C, 1)
        w1 = w1_ref[...].astype(jnp.float32)      # (Ch, C)
        w2 = w2_ref[...].astype(jnp.float32)      # (C, Ch)
        # relu(W1 @ max) + relu(W1 @ avg), then one W2 matmul (W2 is linear).
        h = (jnp.maximum(jnp.dot(w1, maxv, preferred_element_type=jnp.float32), 0.0)
             + jnp.maximum(jnp.dot(w1, avgv, preferred_element_type=jnp.float32), 0.0))
        f = jnp.dot(w2, h, preferred_element_type=jnp.float32)        # (C, 1)
        o_ref[0] = (1.0 / (1.0 + jnp.exp(-f))).astype(o_ref.dtype)


def _choose_spatial_tile(n):
    if n % 128 == 0:
        for t in (512, 256, 128):
            if n % t == 0:
                return t
    return n  # full spatial extent (always a legal block: equals the array dim)


def channel_attention(x_nchw, fc1_w, fc2_w):
    """x_nchw: (B, C, H, W).  fc1_w: (C//r, C), fc2_w: (C, C//r)  (no biases)."""
    B, C, H, W = x_nchw.shape
    Ch = fc1_w.shape[0]
    N = H * W
    TN = _choose_spatial_tile(N)

    x_bcn = x_nchw.reshape(B, C, N)          # free reshape, no transpose
    inv_n = 1.0 / float(N)

    import functools
    kernel = functools.partial(_channel_attention_kernel, inv_n=inv_n)

    out_bc1 = pl.pallas_call(
        kernel,
        out_shape=jax.ShapeDtypeStruct((B, C, 1), x_nchw.dtype),
        grid_spec=pltpu.PrefetchScalarGridSpec(
            num_scalar_prefetch=0,
            grid=(B, N // TN),
            in_specs=[
                pl.BlockSpec((1, C, TN), lambda b, n: (b, 0, n)),  # x tile
                pl.BlockSpec((Ch, C), lambda b, n: (0, 0)),        # fc1 weight
                pl.BlockSpec((C, Ch), lambda b, n: (0, 0)),        # fc2 weight
            ],
            out_specs=pl.BlockSpec((1, C, 1), lambda b, n: (b, 0, 0)),
            scratch_shapes=[
                pltpu.VMEM((C, 1), jnp.float32),   # running max
                pltpu.VMEM((C, 1), jnp.float32),   # running sum
            ],
        ),
        compiler_params=pltpu.CompilerParams(
            dimension_semantics=("parallel", "arbitrary")),
    )(x_bcn, fc1_w, fc2_w)

    return out_bc1.reshape(B, C, 1, 1)


def _reference(x_nchw, fc1_w, fc2_w):
    """Pure-JAX reference mirroring the PyTorch forward exactly."""
    B, C, H, W = x_nchw.shape
    xf = x_nchw.reshape(B, C, H * W)
    mx = jnp.max(xf, axis=-1)                 # (B, C)
    av = jnp.mean(xf, axis=-1)                # (B, C)

    def fc(p):
        h = jnp.maximum(jnp.dot(p, fc1_w.T), 0.0)
        return jnp.dot(h, fc2_w.T)

    out = jax.nn.sigmoid(fc(av) + fc(mx))
    return out.reshape(B, C, 1, 1)


if __name__ == "__main__":
    channel, ratio = 64, 16
    hidden = channel // ratio
    B, H, W = 2, 32, 32

    key = jax.random.PRNGKey(0)
    kx, k1, k2 = jax.random.split(key, 3)

    x = jax.random.normal(kx, (B, channel, H, W), jnp.float32)
    fc1_w = jax.random.normal(k1, (hidden, channel), jnp.float32) * 0.1
    fc2_w = jax.random.normal(k2, (channel, hidden), jnp.float32) * 0.1

    y = channel_attention(x, fc1_w, fc2_w)
    y = jax.block_until_ready(y)

    y_ref = _reference(x, fc1_w, fc2_w)
    assert y.shape == (B, channel, 1, 1) and y.dtype == x.dtype
    assert jnp.allclose(y, y_ref, atol=1e-4, rtol=1e-4), "mismatch vs reference"

    print("KERNEL_OK")
</pallas_src>

<mosaic_0001>
module attributes {stable_mosaic.version = 11 : i64} {
  func.func @_channel_attention_kernel(%arg0: i32, %arg1: i32, %arg2: memref<1x64x512xf32, #tpu.memory_space<vmem>>, %arg3: memref<4x64xf32, #tpu.memory_space<vmem>>, %arg4: memref<64x4xf32, #tpu.memory_space<vmem>>, %arg5: memref<1x64x1xf32, #tpu.memory_space<vmem>>, %arg6: memref<64x1xf32, #tpu.memory_space<vmem>>, %arg7: memref<64x1xf32, #tpu.memory_space<vmem>>) attributes {dimension_semantics = [#tpu.dimension_semantics<parallel>, #tpu.dimension_semantics<arbitrary>], iteration_bounds = array<i64: 2, 2>, scalar_prefetch = 0 : i64, scratch_operands = 2 : i64, tpu.core_type = #tpu.core_type<tc>, window_params = [{transform_indices = @transform_0, window_bounds = array<i64: 1, 64, 512>}, {pipeline_mode = #tpu.pipeline_mode<synchronous>, transform_indices = @transform_1, window_bounds = array<i64: 4, 64>}, {pipeline_mode = #tpu.pipeline_mode<synchronous>, transform_indices = @transform_2, window_bounds = array<i64: 64, 4>}, {transform_indices = @transform_3, window_bounds = array<i64: 1, 64, 1>}]} {
    %c0_i32 = arith.constant 0 : i32
    %0 = arith.cmpi eq, %arg1, %c0_i32 : i32
    %1 = arith.extui %0 : i1 to i32
    %c0_i32_0 = arith.constant 0 : i32
    %2 = arith.cmpi ne, %1, %c0_i32_0 : i32
    scf.if %2 {
      %cst_13 = arith.constant 0xFF800000 : f32
      %18 = vector.broadcast %cst_13 : f32 to vector<64x1xf32>
      %c0_14 = arith.constant 0 : index
      %c0_15 = arith.constant 0 : index
      %19 = vector.load %arg6[%c0_14, %c0_15] : memref<64x1xf32, #tpu.memory_space<vmem>>, vector<64x1xf32>
      tpu.vector_store %arg6[%c0_14, %c0_15], %18 {strides = array<i32>} : memref<64x1xf32, #tpu.memory_space<vmem>>, vector<64x1xf32>,
      %cst_16 = arith.constant 0.000000e+00 : f32
      %20 = vector.broadcast %cst_16 : f32 to vector<64x1xf32>
      %c0_17 = arith.constant 0 : index
      %c0_18 = arith.constant 0 : index
      %21 = vector.load %arg7[%c0_17, %c0_18] : memref<64x1xf32, #tpu.memory_space<vmem>>, vector<64x1xf32>
      tpu.vector_store %arg7[%c0_17, %c0_18], %20 {strides = array<i32>} : memref<64x1xf32, #tpu.memory_space<vmem>>, vector<64x1xf32>,
    } else {
    }
    %c0 = arith.constant 0 : index
    %c0_1 = arith.constant 0 : index
    %c0_2 = arith.constant 0 : index
    %3 = vector.load %arg2[%c0, %c0_1, %c0_2] : memref<1x64x512xf32, #tpu.memory_space<vmem>>, vector<1x64x512xf32>
    %4 = vector.shape_cast %3 : vector<1x64x512xf32> to vector<64x512xf32>
    %c0_3 = arith.constant 0 : index
    %c0_4 = arith.constant 0 : index
    %5 = vector.load %arg6[%c0_3, %c0_4] : memref<64x1xf32, #tpu.memory_space<vmem>>, vector<64x1xf32>
    %cst = arith.constant dense<0xFF800000> : vector<64xf32>
    %6 = vector.multi_reduction <maximumf>, %4, %cst [1] : vector<64x512xf32> to vector<64xf32>
    %7 = vector.shape_cast %6 : vector<64xf32> to vector<64x1xf32>
    %8 = arith.maximumf %5, %7 : vector<64x1xf32>
    %c0_5 = arith.constant 0 : index
    %c0_6 = arith.constant 0 : index
    %9 = vector.load %arg6[%c0_5, %c0_6] : memref<64x1xf32, #tpu.memory_space<vmem>>, vector<64x1xf32>
    tpu.vector_store %arg6[%c0_5, %c0_6], %8 {strides = array<i32>} : memref<64x1xf32, #tpu.memory_space<vmem>>, vector<64x1xf32>,
    %c0_7 = arith.constant 0 : index
    %c0_8 = arith.constant 0 : index
    %10 = vector.load %arg7[%c0_7, %c0_8] : memref<64x1xf32, #tpu.memory_space<vmem>>, vector<64x1xf32>
    %cst_9 = arith.constant dense<0.000000e+00> : vector<64xf32>
    %11 = vector.multi_reduction <add>, %4, %cst_9 [1] : vector<64x512xf32> to vector<64xf32>
    %12 = vector.shape_cast %11 : vector<64xf32> to vector<64x1xf32>
    %13 = arith.addf %10, %12 : vector<64x1xf32>
    %c0_10 = arith.constant 0 : index
    %c0_11 = arith.constant 0 : index
    %14 = vector.load %arg7[%c0_10, %c0_11] : memref<64x1xf32, #tpu.memory_space<vmem>>, vector<64x1xf32>
    tpu.vector_store %arg7[%c0_10, %c0_11], %13 {strides = array<i32>} : memref<64x1xf32, #tpu.memory_space<vmem>>, vector<64x1xf32>,
    %c1_i32 = arith.constant 1 : i32
    %15 = arith.cmpi eq, %arg1, %c1_i32 : i32
    %16 = arith.extui %15 : i1 to i32
    %c0_i32_12 = arith.constant 0 : i32
    %17 = arith.cmpi ne, %16, %c0_i32_12 : i32
    scf.if %17 {
      %c0_13 = arith.constant 0 : index
      %c0_14 = arith.constant 0 : index
      %18 = vector.load %arg6[%c0_13, %c0_14] : memref<64x1xf32, #tpu.memory_space<vmem>>, vector<64x1xf32>
      %c0_15 = arith.constant 0 : index
      %c0_16 = arith.constant 0 : index
      %19 = vector.load %arg7[%c0_15, %c0_16] : memref<64x1xf32, #tpu.memory_space<vmem>>, vector<64x1xf32>
      %cst_17 = arith.constant 9.765625E-4 : f32
      %20 = vector.broadcast %cst_17 : f32 to vector<64x1xf32>
      %21 = arith.mulf %19, %20 : vector<64x1xf32>
      %c0_18 = arith.constant 0 : index
      %c0_19 = arith.constant 0 : index
      %22 = vector.load %arg3[%c0_18, %c0_19] : memref<4x64xf32, #tpu.memory_space<vmem>>, vector<4x64xf32>
      %c0_20 = arith.constant 0 : index
      %c0_21 = arith.constant 0 : index
      %23 = vector.load %arg4[%c0_20, %c0_21] : memref<64x4xf32, #tpu.memory_space<vmem>>, vector<64x4xf32>
      %cst_22 = arith.constant dense<0.000000e+00> : vector<4x1xf32>
      %24 = tpu.matmul %22, %18, %cst_22 {dimension_numbers = #tpu.dot_dimension_numbers<[1], [0], [0], [1], [0, 0, 1, 1], [], []>} : vector<4x64xf32>, vector<64x1xf32>, vector<4x1xf32> -> vector<4x1xf32>
      %cst_23 = arith.constant 0.000000e+00 : f32
      %25 = vector.broadcast %cst_23 : f32 to vector<4x1xf32>
      %26 = arith.maximumf %24, %25 : vector<4x1xf32>
      %cst_24 = arith.constant dense<0.000000e+00> : vector<4x1xf32>
      %27 = tpu.matmul %22, %21, %cst_24 {dimension_numbers = #tpu.dot_dimension_numbers<[1], [0], [0], [1], [0, 0, 1, 1], [], []>} : vector<4x64xf32>, vector<64x1xf32>, vector<4x1xf32> -> vector<4x1xf32>
      %cst_25 = arith.constant 0.000000e+00 : f32
      %28 = vector.broadcast %cst_25 : f32 to vector<4x1xf32>
      %29 = arith.maximumf %27, %28 : vector<4x1xf32>
      %30 = arith.addf %26, %29 : vector<4x1xf32>
      %cst_26 = arith.constant dense<0.000000e+00> : vector<64x1xf32>
      %31 = tpu.matmul %23, %30, %cst_26 {dimension_numbers = #tpu.dot_dimension_numbers<[1], [0], [0], [1], [0, 0, 1, 1], [], []>} : vector<64x4xf32>, vector<4x1xf32>, vector<64x1xf32> -> vector<64x1xf32>
      %cst_27 = arith.constant 0.000000e+00 : f32
      %32 = vector.broadcast %cst_27 : f32 to vector<64x1xf32>
      %33 = arith.subf %32, %31 : vector<64x1xf32>
      %34 = math.exp %33 : vector<64x1xf32>
      %cst_28 = arith.constant 1.000000e+00 : f32
      %35 = vector.broadcast %cst_28 : f32 to vector<64x1xf32>
      %36 = arith.addf %35, %34 : vector<64x1xf32>
      %cst_29 = arith.constant 1.000000e+00 : f32
      %37 = vector.broadcast %cst_29 : f32 to vector<64x1xf32>
      %38 = arith.divf %37, %36 : vector<64x1xf32>
      %c0_30 = arith.constant 0 : index
      %c0_31 = arith.constant 0 : index
      %c0_32 = arith.constant 0 : index
      %39 = vector.load %arg5[%c0_30, %c0_31, %c0_32] : memref<1x64x1xf32, #tpu.memory_space<vmem>>, vector<1x64x1xf32>
      %40 = vector.shape_cast %39 : vector<1x64x1xf32> to vector<64x1xf32>
      %41 = vector.shape_cast %38 : vector<64x1xf32> to vector<1x64x1xf32>
      tpu.vector_store %arg5[%c0_30, %c0_31, %c0_32], %41 {strides = array<i32>} : memref<1x64x1xf32, #tpu.memory_space<vmem>>, vector<1x64x1xf32>,
    } else {
    }
    return
  }
  func.func @transform_0(%arg0: i32, %arg1: i32) -> (i32, i32, i32) {
    %c0_i32 = arith.constant 0 : i32
    %c0_i32_0 = arith.constant 0 : i32
    return %arg0, %c0_i32, %arg1 : i32, i32, i32
  }
  func.func @transform_1(%arg0: i32, %arg1: i32) -> (i32, i32) {
    %c0_i32 = arith.constant 0 : i32
    %c0_i32_0 = arith.constant 0 : i32
    %c0_i32_1 = arith.constant 0 : i32
    return %c0_i32, %c0_i32_0 : i32, i32
  }
  func.func @transform_2(%arg0: i32, %arg1: i32) -> (i32, i32) {
    %c0_i32 = arith.constant 0 : i32
    %c0_i32_0 = arith.constant 0 : i32
    %c0_i32_1 = arith.constant 0 : i32
    return %c0_i32, %c0_i32_0 : i32, i32
  }
  func.func @transform_3(%arg0: i32, %arg1: i32) -> (i32, i32, i32) {
    %c0_i32 = arith.constant 0 : i32
    %c0_i32_0 = arith.constant 0 : i32
    %c0_i32_1 = arith.constant 0 : i32
    return %arg0, %c0_i32, %c0_i32_0 : i32, i32, i32
  }
}

</mosaic_0001>

<bundles_post_ra>
// kernel: tpu_custom_call.1
= control target key start
LH: loop header
LB: loop body
LE: loop exit
PB: predicated region body
PF: predicated region fallthrough
CT: control target
= control target key end

     0   :  { %8 = vsyncpa [#allocation5], 0  ;;  %s1502_s0 = inlined_call_operand.hbm [shape: f32[2,64,1024], index: 0, kind: input, shape index: {}]   ;;  %s1503_s1 = inlined_call_operand.vmem [shape: f32[4,64], index: 1, kind: input, shape index: {}]   ;;  %s1504_s2 = inlined_call_operand.vmem [shape: f32[64,4], index: 2, kind: input, shape index: {}]   ;;  %s1505_s3 = inlined_call_operand.vmem [shape: f32[2,64,1], index: 3, kind: output, shape index: {}]  }
   0x1   :  { %10 = vsyncpa [#allocation5 + $0x1], 0  ;;  %s1216_s12 = smov 0   ;;  %s1218_s13 = smov 0  }
   0x2   :  { %s1220_s14 = smov 0   ;;  %s1222_s15 = smov 0  }
   0x3   :  { %s1224_s16 = smov 0   ;;  %s1226_s17 = smov 0  }
   0x4   :  { %s1228_s18 = smov 0   ;;  %s1230_s19 = smov 0  }
   0x5 LB: > { %s845_s20 = sadd.s32 4294967295, %s1185_s19   ;;  %s25_s21 = sadd.s32 1, %s1177_s17  ;;  %s1185_s19 = sphi %s1230_s19, %s16_s19   ;;  %s1181_s18 = sphi %s1228_s18, %s1515_s18   ;;  %s1177_s17 = sphi %s1226_s17, %s1514_s17   ;;  %s1173_s16 = sphi %s1224_s16, %s1513_s16   ;;  %s1169_s15 = sphi %s1222_s15, %s1512_s15   ;;  %s1165_s14 = sphi %s1220_s14, %s1511_s14   ;;  %s1161_s13 = sphi %s1218_s13, %s1510_s13   ;;  %s1157_s12 = sphi %s1216_s12, %s1509_s12  }
   0x6   : > { %p26_p0 = scmp.ge.s32.totalorder %s25_s21, 2  ;;  %s28_s22 = sadd.s32 1, %s1181_s18 }
   0x7   : > { %s37_s23 = sadd.s32 1, %s1165_s14  ;;  %p44_p1 = scmp.ne.s32.totalorder %s1165_s14, %s1161_s13 }
   0x8   : > { %s1517_s21 = smov (%p26_p0, %s25_s21), 0  ;;  %s1519_s22 = smov (!%p26_p0, %s28_s22), %s1181_s18 }
   0x9   : > { %s33_s24 = ssub.s32 %s1177_s17, %s1517_s21  ;;  %p45_p2 = scmp.eq.s32.totalorder %s1185_s19, 0 }
   0xa   : > { %p30_p3 = scmp.ge.s32.totalorder %s1519_s22, 2  ;;  %p50_p4 = scmp.ne.s32.totalorder %s1161_s13, %s1157_s12 }
   0xb   : > { %p1267_p5 = por %p45_p2, %p44_p1  ;;  %p51_p6 = scmp.eq.s32.totalorder %s845_s20, 0 }
   0xc   : > { %s1521_s22 = smov (%p30_p3, %s1519_s22), 0  ;;  %p984_p8 = scmp.lt.s32.totalorder %s1185_s19, 4 }
   0xd   : > { %p1273_p7 = por %p51_p6, %p50_p4  ;;  %s32_s27 = ssub.s32 %s1181_s18, %s1521_s22 }
   0xe   : > { %s34_s28 = sor.u32 %s33_s24, %s32_s27  ;;  %s148_s29 = sand.u32 1, %s1165_s14  }
   0xf   : > { %p35_p9 = scmp.eq.s32.totalorder %s34_s28, 0  ;;  %s849_s30 = sshll.u32 %s148_s29, 8 }
  0x10   : > { %s850_s4 = sshll.u32 %s1177_s17, 2  ;;  %s851_s6 = sshll.u32 %s1181_s18, 6 }
  0x11   : > { %s1283_s5 = scalar_select %p35_p9, %s1165_s14, %s37_s23  }
  0x12   : > { %s158_s7 = sadd.s32 %s851_s6, %s850_s4  ;;  %s152_s8 = scalar_lea.vmem [#allocation4], %s849_s30 }
  0x13   : > { %s161_s9 = sshll.u32 %s152_s8, 4  ;;  %s852_s10 = sshll.u32 %s158_s7, 7  ;;  %s1286_s9 = int_to_ptr.vmem [resolvable:$true] %s161_s9 }
  0x14   : > { %s1291_s20 = scalar_lea.hbm %s1502_s0, %s852_s10  ;;  %p1297_p10 = pnand %p984_p8, %p1267_p5 }
  0x15   : > { %s1301_s24 = scalar_lea.sflag [#allocation5], %s148_s29  ;;  %s1089_s27 = scalar_lea.hbm %s1291_s20, 4096 }
  0x16   : > { %p1090_p11 = scmp.ne.s32.totalorder %s1291_s20, %s1089_s27  ;;  %p1091_p12 = pneg %p1297_p10 }
  0x17   : > { %s1094_s30 = scalar_lea.hbm %s1502_s0, 16384  ;;  %p1095_p1 = scmp.lt.u32.totalorder %s1291_s20, %s1502_s0 }
  0x18   : > { %p1092_p13 = pnand %p1091_p12, %p1090_p11  ;;  %p1096_p2 = scmp.lt.u32.totalorder %s1094_s30, %s1089_s27 }
  0x19   : > { %p1098_p4 = scmp.lt.u32.totalorder %s1089_s27, %s1291_s20 }
  0x1a   : > { %p1093_p0 = pneg %p1092_p13  ;;  %p1097_p3 = por %p1096_p2, %p1095_p1 }
  0x1c   : > { %p1099_p5 = por %p1098_p4, %p1097_p3 }
  0x1e   : > { %p1100_p6 = pnand %p1099_p5, %p1093_p0 }
  0x20   : > { %1103 = shalt.err (!%p1100_p6)
}
  0x21   : > { %s1104_s29 = scalar_lea.vmem %s1286_s9, 4096  ;;  %s1187_s7 = smov [#allocation4]  }
  0x22   : > { %p1105_p8 = scmp.ne.s32.totalorder %s1286_s9, %s1104_s29  ;;  %s1109_s8 = sshll.u32 %s1187_s7, 4  ;;  %s1110_s8 = int_to_ptr.vmem [resolvable:$false] %s1109_s8 }
  0x23   : > { %s1111_s10 = scalar_lea.vmem %s1110_s8, 8192  ;;  %p1112_p13 = scmp.lt.s32.totalorder %s1286_s9, %s1110_s8 }
  0x24   : > { %p1107_p9 = pnand %p1105_p8, %p1091_p12  ;;  %p1113_p1 = scmp.lt.s32.totalorder %s1111_s10, %s1104_s29 }
  0x26   : > { %p1108_p11 = pneg %p1107_p9  ;;  %p1114_p2 = por %p1113_p1, %p1112_p13 }
  0x28   : > { %p1115_p3 = pnand %p1114_p2, %p1108_p11 }
  0x2a   : > { %1118 = shalt.err (!%p1115_p3)
}
  0x2b   : > { %s1188_s11 = smov 1024   ;;  %s1189_s12 = smov 512  }
  0x2c   : > { %s1190_s27 = smov 32   ;;  %p853_p12 = scmp.ge.s32.totalorder %s1185_s19, 1 }
  0x2d   : > { %983 = dma.hbm_to_vmem [thread:$0]  (!%p1297_p10), %s1291_s20, 4096, %s1286_s9, %s1301_s24, %s1188_s11, %s1189_s12, %s1190_s27  }
  0x2e   : > { %p169_p0 = scmp.lt.s32.totalorder %s1185_s19, 5 }
  0x30   : > { %p170_p4 = pnand %p853_p12, %p169_p0 }
  0x31   : > { %s175_s25 = sand.u32 (!%p170_p4), 1, %s1161_s13  }
  0x32   : > { %173 = sbr.rel (%p170_p4) target bundleno = 730 (0x2da), region = 32  ;;  %s854_s28 = sshll.u32 (!%p170_p4), %s175_s25, 8 }
  0x33   : > { %s176_s30 = scalar_lea.sflag (!%p170_p4), [#allocation5], %s175_s25  ;;  %s1332_s4 = scalar_lea.vmem (!%p170_p4), [#allocation4], %s854_s28 }
  0x39   : > { %1152 = dma.done.wait (%p1273_p7), %s176_s30, 4096  }
  0x3a   : > { %1154 = vsyncadd (%p1273_p7), %s176_s30, 4294963200  ;;  %p203_p5 = scmp.lt.s32.totalorder %s1173_s16, 1  ;;  %p857_p10 = scmp.ne.s32.totalorder %s1169_s15, 0 }
  0x3b   : > { %vm212_vm0 = vcmask (!%p857_p10), 7168   ;;  %v1191_v0 = vmov (!%p857_p10), -inf   ;;  %v1192_v1 = vmov (!%p857_p10), 0.0  }
  0x3c   : > { %s1523_s16 = smov (!%p203_p5, %s1173_s16), 1  ;;  %211 = sbr.rel (%p857_p10) target bundleno = 69 (0x45), region = 40 }
  0x3d   : > { %s872_s9 = sshll.u32 %s1523_s16, 6  ;;  %213 = vst.msk [vmem:[#allocation2] sm:$0xff] (!%p857_p10), %vm212_vm0, %v1191_v0  ;;  %214 = vst.msk [vmem:[#allocation2 + $0x8] sm:$0xff] (!%p857_p10), %vm212_vm0, %v1191_v0 }
  0x3e   : > { %s1343_s24 = scalar_lea.vmem %s1505_s3, %s872_s9  ;;  %215 = vst.msk [vmem:[#allocation2 + $0x10] sm:$0xff] (!%p857_p10), %vm212_vm0, %v1191_v0  ;;  %216 = vst.msk [vmem:[#allocation2 + $0x18] sm:$0xff] (!%p857_p10), %vm212_vm0, %v1191_v0 }
  0x3f   : > { %217 = vst.msk [vmem:[#allocation2 + $0x20] sm:$0xff] (!%p857_p10), %vm212_vm0, %v1191_v0  ;;  %218 = vst.msk [vmem:[#allocation2 + $0x28] sm:$0xff] (!%p857_p10), %vm212_vm0, %v1191_v0 }
  0x40   : > { %219 = vst.msk [vmem:[#allocation2 + $0x30] sm:$0xff] (!%p857_p10), %vm212_vm0, %v1191_v0  ;;  %220 = vst.msk [vmem:[#allocation2 + $0x38] sm:$0xff] (!%p857_p10), %vm212_vm0, %v1191_v0 }
  0x41   : > { %221 = vst.msk [vmem:[#allocation3] sm:$0xff] (!%p857_p10), %vm212_vm0, %v1192_v1  ;;  %222 = vst.msk [vmem:[#allocation3 + $0x8] sm:$0xff] (!%p857_p10), %vm212_vm0, %v1192_v1 }
  0x42   : > { %223 = vst.msk [vmem:[#allocation3 + $0x10] sm:$0xff] (!%p857_p10), %vm212_vm0, %v1192_v1  ;;  %224 = vst.msk [vmem:[#allocation3 + $0x18] sm:$0xff] (!%p857_p10), %vm212_vm0, %v1192_v1 }
  0x43   : > { %225 = vst.msk [vmem:[#allocation3 + $0x20] sm:$0xff] %vm212_vm0, %v1192_v1  ;;  %226 = vst.msk [vmem:[#allocation3 + $0x28] sm:$0xff] %vm212_vm0, %v1192_v1 }
  0x44   : > { %227 = vst.msk [vmem:[#allocation3 + $0x30] sm:$0xff] %vm212_vm0, %v1192_v1  ;;  %228 = vst.msk [vmem:[#allocation3 + $0x38] sm:$0xff] %vm212_vm0, %v1192_v1 }
  0x45 PF: > { %v1363_v2 = vld [vmem:[%s1332_s4 + $0x40] sm:$0xff]  ;;  %v1366_v3 = vld [vmem:[%s1332_s4 + $0x48] sm:$0xff]  ;;  %v1369_v4 = vld [vmem:[%s1332_s4 + $0x50] sm:$0xff]  ;;  %vm317_vm1 = vcmask 7168   ;;  %p858_p7 = scmp.ne.s32.totalorder %s1169_s15, 1 }
  0x46   : > { %v279_v5 = vmax.f32 %v1363_v2, %v1366_v3  ;;  %v229_v6 = vld [vmem:[%s1332_s4] sm:$0xff]  ;;  %v230_v7 = vld [vmem:[%s1332_s4 + $0x8] sm:$0xff]  ;;  %v1376_v8 = vld [vmem:[%s1332_s4 + $0x58] sm:$0xff]  ;;  %v344_v63 = vadd.f32 %v1366_v3, %v1363_v2  ;;  %vm1194_vm2 = vmmov (!%p858_p7), 0   ;;  %vm427_vm3 = vcmask (!%p858_p7), 523264  }
  0x47   : > { %v231_v9 = vld [vmem:[%s1332_s4 + $0x10] sm:$0xff]  ;;  %v269_v10 = vmax.f32 %v229_v6, %v230_v7  ;;  %v241_v11 = vld [vmem:[%s1332_s4 + $0x60] sm:$0xff]  ;;  %v232_v13 = vld [vmem:[%s1332_s4 + $0x18] sm:$0xff]  ;;  %v334_v56 = vadd.f32 %v230_v7, %v229_v6  ;;  %vm574_vm4 = vcmask (!%p858_p7), 31744   ;;  %vm599_vm5 = vcmask (!%p858_p7), 1043456  }
  0x48   : > { %v280_v12 = vmax.f32 %v279_v5, %v1369_v4  ;;  %v242_v14 = vld [vmem:[%s1332_s4 + $0x68] sm:$0xff]  ;;  %v243_v15 = vld [vmem:[%s1332_s4 + $0x70] sm:$0xff]  ;;  %v233_v18 = vld [vmem:[%s1332_s4 + $0x20] sm:$0xff] }
  0x49   : > { %v270_v16 = vmax.f32 %v269_v10, %v231_v9  ;;  %v284_v17 = vmax.f32 %v241_v11, %v242_v14  ;;  %v234_v19 = vld [vmem:[%s1332_s4 + $0x28] sm:$0xff]  ;;  %v235_v20 = vld [vmem:[%s1332_s4 + $0x30] sm:$0xff]  ;;  %v244_v22 = vld [vmem:[%s1332_s4 + $0x78] sm:$0xff]  ;;  %v349_v60 = vadd.f32 %v242_v14, %v241_v11  ;;  %v335_v62 = vadd.f32 %v334_v56, %v231_v9 }
  0x4a   : > { %v281_v21 = vmax.f32 %v280_v12, %v1376_v8  ;;  %v274_v23 = vmax.f32 %v233_v18, %v234_v19  ;;  %v249_v24 = vld [vmem:[%s1332_s4 + $0xa0] sm:$0xff]  ;;  %v250_v25 = vld [vmem:[%s1332_s4 + $0xa8] sm:$0xff]  ;;  %v236_v28 = vld [vmem:[%s1332_s4 + $0x38] sm:$0xff]  ;;  %v339_v52 = vadd.f32 %v234_v19, %v233_v18  ;;  %v345_v12 = vadd.f32 %v344_v63, %v1369_v4 }
  0x4b   : > { %v271_v26 = vmax.f32 %v270_v16, %v232_v13  ;;  %v285_v27 = vmax.f32 %v284_v17, %v243_v15  ;;  %v251_v29 = vld [vmem:[%s1332_s4 + $0xb0] sm:$0xff]  ;;  %v294_v30 = vmax.f32 %v249_v24, %v250_v25  ;;  %v245_v31 = vld [vmem:[%s1332_s4 + $0x80] sm:$0xff]  ;;  %v252_v33 = vld [vmem:[%s1332_s4 + $0xb8] sm:$0xff]  ;;  %v350_v1 = vadd.f32 %v349_v60, %v243_v15 }
  0x4c   : > { %282 = vmax.xlane.f32.xlu1 %v281_v21  ;;  %v275_v32 = vmax.f32 %v274_v23, %v235_v20  ;;  %v246_v34 = vld [vmem:[%s1332_s4 + $0x88] sm:$0xff]  ;;  %v247_v35 = vld [vmem:[%s1332_s4 + $0x90] sm:$0xff]  ;;  %v257_v39 = vld [vmem:[%s1332_s4 + $0xe0] sm:$0xff]  ;;  %v340_v59 = vadd.f32 %v339_v52, %v235_v20  ;;  %v359_v5 = vadd.f32 %v250_v25, %v249_v24  ;;  %v336_v10 = vadd.f32 %v335_v62, %v232_v13 }
  0x4d   : > { %272 = vmax.xlane.f32.xlu0 %v271_v26  ;;  %v286_v36 = vmax.f32 %v285_v27, %v244_v22  ;;  %v295_v37 = vmax.f32 %v294_v30, %v251_v29  ;;  %v289_v38 = vmax.f32 %v245_v31, %v246_v34  ;;  %v258_v40 = vld [vmem:[%s1332_s4 + $0xe8] sm:$0xff]  ;;  %v259_v41 = vld [vmem:[%s1332_s4 + $0xf0] sm:$0xff]  ;;  %v248_v43 = vld [vmem:[%s1332_s4 + $0x98] sm:$0xff]  ;;  %v354_v6 = vadd.f32 %v246_v34, %v245_v31 }
  0x4e   : > { %v276_v42 = vmax.f32 %v275_v32, %v236_v28  ;;  %v304_v44 = vmax.f32 %v257_v39, %v258_v40  ;;  %v253_v45 = vld [vmem:[%s1332_s4 + $0xc0] sm:$0xff]  ;;  %v254_v46 = vld [vmem:[%s1332_s4 + $0xc8] sm:$0xff]  ;;  %v255_v48 = vld [vmem:[%s1332_s4 + $0xd0] sm:$0xff]  ;;  %v341_v0 = vadd.f32 %v340_v59, %v236_v28  ;;  %v351_v7 = vadd.f32 %v350_v1, %v244_v22 }
  0x4f   : > { %v290_v47 = vmax.f32 %v289_v38, %v247_v35  ;;  %v299_v49 = vmax.f32 %v253_v45, %v254_v46  ;;  %v296_v50 = vmax.f32 %v295_v37, %v252_v33  ;;  %v260_v54 = vld [vmem:[%s1332_s4 + $0xf8] sm:$0xff]  ;;  %v360_v16 = vadd.f32 %v359_v5, %v251_v29  ;;  %v263_v19 = vld [vmem:[#allocation2 + $0x10] sm:$0xff]  ;;  %v261_v20 = vld [vmem:[#allocation2] sm:$0xff] }
  0x50   : > { %287 = vmax.xlane.f32.xlu1 %v286_v36  ;;  %v305_v51 = vmax.f32 %v304_v44, %v259_v41  ;;  %v256_v57 = vld [vmem:[%s1332_s4 + $0xd8] sm:$0xff]  ;;  %v369_v17 = vadd.f32 %v258_v40, %v257_v39  ;;  %v346_v11 = vadd.f32 %v345_v12, %v1376_v8  ;;  %v355_v9 = vadd.f32 %v354_v6, %v247_v35  ;;  %v262_v25 = vld [vmem:[#allocation2 + $0x8] sm:$0xff]  ;;  %v265_v31 = vld [vmem:[#allocation2 + $0x20] sm:$0xff] }
  0x51   : > { %277 = vmax.xlane.f32.xlu0 %v276_v42  ;;  %v291_v53 = vmax.f32 %v290_v47, %v248_v43  ;;  %v300_v55 = vmax.f32 %v299_v49, %v255_v48  ;;  %v364_v14 = vadd.f32 %v254_v46, %v253_v45  ;;  %v361_v2 = vadd.f32 %v360_v16, %v252_v33  ;;  %v264_v24 = vld [vmem:[#allocation2 + $0x18] sm:$0xff]  ;;  %v266_v30 = vld [vmem:[#allocation2 + $0x28] sm:$0xff]  ;;  %v267_v37 = vld [vmem:[#allocation2 + $0x30] sm:$0xff] }
  0x52   : > { %v306_v58 = vmax.f32 %v305_v51, %v260_v54  ;;  %v370_v3 = vadd.f32 %v369_v17, %v259_v41  ;;  %v356_v15 = vadd.f32 %v355_v9, %v248_v43  ;;  %v268_v36 = vld [vmem:[#allocation2 + $0x38] sm:$0xff]  ;;  %v327_v42 = vld [vmem:[#allocation3 + $0x8] sm:$0xff]  ;;  %v326_v43 = vld [vmem:[#allocation3] sm:$0xff]  ;;  %v1193_v6 = vmov (!%p858_p7), 0.0|0.0  }
  0x53   : > { %v301_v61 = vmax.f32 %v300_v55, %v256_v57  ;;  %v365_v18 = vadd.f32 %v364_v14, %v255_v48  ;;  %v329_v48 = vld [vmem:[#allocation3 + $0x18] sm:$0xff]  ;;  %v328_v49 = vld [vmem:[#allocation3 + $0x10] sm:$0xff]  ;;  %v330_v55 = vld [vmem:[#allocation3 + $0x20] sm:$0xff]  ;;  %952 = vmatprep.subr.bf16.mxu0 (!%p858_p7), %v1193_v6  ;;  %964 = vmatprep.subr.bf16.mxu1 (!%p858_p7), %v1193_v6 }
  0x54   : > { %297 = vmax.xlane.f32.xlu1 %v296_v50  ;;  %v371_v13 = vadd.f32 %v370_v3, %v260_v54  ;;  %v331_v54 = vld [vmem:[#allocation3 + $0x28] sm:$0xff]  ;;  %v333_v60 = vld [vmem:[#allocation3 + $0x38] sm:$0xff] }
  0x55   : > { %292 = vmax.xlane.f32.xlu0 %v291_v53  ;;  %v366_v4 = vadd.f32 %v365_v18, %v256_v57 }
  0x58   : > { %307 = vmax.xlane.f32.xlu1 %v306_v58 }
  0x59   : > { %302 = vmax.xlane.f32.xlu0 %v301_v61  ;;  %v332_v61 = vld [vmem:[#allocation3 + $0x30] sm:$0xff] }
  0x5c   : > { %342 = vadd.xlane.f32.xlu1 %v341_v0 }
  0x5d   : > { %337 = vadd.xlane.f32.xlu0 %v336_v10 }
  0x60   : > { %352 = vadd.xlane.f32.xlu1 %v351_v7 }
  0x61   : > { %347 = vadd.xlane.f32.xlu0 %v346_v11 }
  0x64   : > { %362 = vadd.xlane.f32.xlu1 %v361_v2 }
  0x65   : > { %357 = vadd.xlane.f32.xlu0 %v356_v15  ;;  %v1195_v15 = vmov (!%p858_p7), 0.0  }
  0x66   : > { %916 = vmatprep.mubr.msk.f32.mxu0 (!%p858_p7), %vm1194_vm2, %v1195_v15  ;;  %935 = vmatprep.mubr.msk.f32.mxu1 (!%p858_p7), %vm1194_vm2, %v1195_v15 }
  0x68   : > { %372 = vadd.xlane.f32.xlu1 %v371_v13 }
  0x69   : > { %367 = vadd.xlane.f32.xlu0 %v366_v4 }
  0xd9   : > { %v283_v21 = vpop.xlane.xlu1 %282 }
  0xda   : > { %v311_v22 = vmax.f32 %v263_v19, %v283_v21  ;;  %v273_v8 = vpop.xlane.xlu0 %272 }
  0xdb   : > { %v309_v23 = vmax.f32 %v261_v20, %v273_v8 }
  0xdc   : > { %320 = vst.msk [vmem:[#allocation2 + $0x10] sm:$0xff] %vm317_vm1, %v311_v22 }
  0xdd   : > { %318 = vst.msk [vmem:[#allocation2] sm:$0xff] %vm317_vm1, %v309_v23  ;;  %v288_v26 = vpop.xlane.xlu1 %287 }
  0xde   : > { %v312_v27 = vmax.f32 %v264_v24, %v288_v26  ;;  %v278_v28 = vpop.xlane.xlu0 %277 }
  0xdf   : > { %v310_v29 = vmax.f32 %v262_v25, %v278_v28 }
  0xe0   : > { %321 = vst.msk [vmem:[#allocation2 + $0x18] sm:$0xff] %vm317_vm1, %v312_v27 }
  0xe1   : > { %319 = vst.msk [vmem:[#allocation2 + $0x8] sm:$0xff] %vm317_vm1, %v310_v29  ;;  %v298_v32 = vpop.xlane.xlu1 %297 }
  0xe2   : > { %v314_v33 = vmax.f32 %v266_v30, %v298_v32  ;;  %v293_v34 = vpop.xlane.xlu0 %292 }
  0xe3   : > { %v313_v35 = vmax.f32 %v265_v31, %v293_v34  ;;  %v396_v11 = vld [vmem:[#allocation2 + $0x10] sm:$0xff] (!%p858_p7) }
  0xe4   : > { %323 = vst.msk [vmem:[#allocation2 + $0x28] sm:$0xff] %vm317_vm1, %v314_v33  ;;  %v394_v5 = vld [vmem:[#allocation2] sm:$0xff] (!%p858_p7) }
  0xe5   : > { %322 = vst.msk [vmem:[#allocation2 + $0x20] sm:$0xff] %vm317_vm1, %v313_v35  ;;  %v308_v38 = vpop.xlane.xlu1 %307 }
  0xe6   : > { %v316_v39 = vmax.f32 %v268_v36, %v308_v38  ;;  %v303_v40 = vpop.xlane.xlu0 %302  ;;  %v418_v36 = vld [vmem:[%s1503_s1] sm:$0xf] (!%p858_p7) }
  0xe7   : > { %v315_v41 = vmax.f32 %v267_v37, %v303_v40  ;;  %v397_v9 = vld [vmem:[#allocation2 + $0x18] sm:$0xff] (!%p858_p7)  ;;  %v419_v37 = vld [vmem:[%s1504_s2] sm:$0xff] (!%p858_p7) }
  0xe8   : > { %325 = vst.msk [vmem:[#allocation2 + $0x38] sm:$0xff] %vm317_vm1, %v316_v39  ;;  %v395_v10 = vld [vmem:[#allocation2 + $0x8] sm:$0xff] (!%p858_p7)  ;;  %v956_v18 = vpack.c.bf16 (!%p858_p7), %v397_v9, %v396_v11  ;;  %v423_v38 = vld [vmem:[%s1504_s2 + $0x20] sm:$0xff] (!%p858_p7) }
  0xe9   : > { %324 = vst.msk [vmem:[#allocation2 + $0x30] sm:$0xff] %vm317_vm1, %v315_v41  ;;  %v343_v44 = vpop.xlane.xlu1 %342  ;;  %v953_v7 = vpack.c.bf16 (!%p858_p7), %v395_v10, %v394_v5 }
  0xea   : > { %v375_v45 = vadd.f32 %v343_v44, %v327_v42  ;;  %v338_v46 = vpop.xlane.xlu0 %337 }
  0xeb   : > { %v374_v47 = vadd.f32 %v338_v46, %v326_v43  ;;  %954 = vmatpush3.bf16.msra.mxu0 (!%p858_p7), %v953_v7  ;;  %v399_v8 = vld [vmem:[#allocation2 + $0x28] sm:$0xff] (!%p858_p7) }
  0xec   : > { %383 = vst.msk [vmem:[#allocation3 + $0x8] sm:$0xff] %vm317_vm1, %v375_v45  ;;  %955 = vmatprep.subr.bf16.mxu0 (!%p858_p7), %v1193_v6  ;;  %v398_v22 = vld [vmem:[#allocation2 + $0x20] sm:$0xff] (!%p858_p7)  ;;  %v420_v46 = vld [vmem:[%s1504_s2 + $0x8] sm:$0xff] (!%p858_p7) }
  0xed   : > { %382 = vst.msk [vmem:[#allocation3] sm:$0xff] %vm317_vm1, %v374_v47  ;;  %v353_v50 = vpop.xlane.xlu1 %352  ;;  %v959_v26 = vpack.c.bf16 (!%p858_p7), %v399_v8, %v398_v22  ;;  %v424_v47 = vld [vmem:[%s1504_s2 + $0x28] sm:$0xff] (!%p858_p7) }
  0xee   : > { %v377_v51 = vadd.f32 %v353_v50, %v329_v48  ;;  %v348_v52 = vpop.xlane.xlu0 %347  ;;  %v421_v48 = vld [vmem:[%s1504_s2 + $0x10] sm:$0xff] (!%p858_p7)  ;;  %v422_v50 = vld [vmem:[%s1504_s2 + $0x18] sm:$0xff] (!%p858_p7) }
  0xef   : > { %v376_v53 = vadd.f32 %v348_v52, %v328_v49  ;;  %957 = vmatpush3.bf16.msra.mxu0 (!%p858_p7), %v956_v18  ;;  %v401_v30 = vld [vmem:[#allocation2 + $0x38] sm:$0xff] (!%p858_p7)  ;;  %v425_v49 = vld [vmem:[%s1504_s2 + $0x30] sm:$0xff] (!%p858_p7) }
  0xf0   : > { %385 = vst.msk [vmem:[#allocation3 + $0x18] sm:$0xff] %vm317_vm1, %v377_v51  ;;  %958 = vmatprep.subr.bf16.mxu0 (!%p858_p7), %v1193_v6  ;;  %v400_v29 = vld [vmem:[#allocation2 + $0x30] sm:$0xff] (!%p858_p7)  ;;  %v426_v51 = vld [vmem:[%s1504_s2 + $0x38] sm:$0xff] (!%p858_p7) }
  0xf1   : > { %384 = vst.msk [vmem:[#allocation3 + $0x10] sm:$0xff] %vm317_vm1, %v376_v53  ;;  %v363_v56 = vpop.xlane.xlu1 %362  ;;  %v962_v34 = vpack.c.bf16 (!%p858_p7), %v401_v30, %v400_v29 }
  0xf2   : > { %v379_v57 = vadd.f32 %v363_v56, %v331_v54  ;;  %v358_v58 = vpop.xlane.xlu0 %357 }
  0xf3   : > { %v378_v59 = vadd.f32 %v358_v58, %v330_v55  ;;  %393 = sbr.rel (%p858_p7) target bundleno = 730 (0x2da), region = 44  ;;  %v403_v16 = vld [vmem:[#allocation3 + $0x8] sm:$0xff] (!%p858_p7)  ;;  %960 = vmatpush3.bf16.msra.mxu0 (!%p858_p7), %v959_v26 }
  0xf4   : > { %387 = vst.msk [vmem:[#allocation3 + $0x28] sm:$0xff] %vm317_vm1, %v379_v57  ;;  %v402_v12 = vld [vmem:[#allocation3] sm:$0xff] (!%p858_p7)  ;;  %v411_v14 = vmul.f32 (!%p858_p7), 0.0009765625, %v403_v16  ;;  %961 = vmatprep.subr.bf16.mxu0 (!%p858_p7), %v1193_v6 }
  0xf5   : > { %386 = vst.msk [vmem:[#allocation3 + $0x20] sm:$0xff] %vm317_vm1, %v378_v59  ;;  %v373_v62 = vpop.xlane.xlu1 %372  ;;  %v410_v17 = vmul.f32 (!%p858_p7), 0.0009765625, %v402_v12 }
  0xf6   : > { %v381_v63 = vadd.f32 %v373_v62, %v333_v60  ;;  %v368_v0 = vpop.xlane.xlu0 %367 }
  0xf7   : > { %v380_v1 = vadd.f32 %v368_v0, %v332_v61  ;;  %v405_v3 = vld [vmem:[#allocation3 + $0x18] sm:$0xff] (!%p858_p7)  ;;  %v965_v21 = vpack.c.bf16 (!%p858_p7), %v411_v14, %v410_v17  ;;  %963 = vmatpush3.bf16.msra.mxu0 (!%p858_p7), %v962_v34 }
  0xf8   : > { %389 = vst.msk [vmem:[#allocation3 + $0x38] sm:$0xff] %vm317_vm1, %v381_v63  ;;  %v404_v2 = vld [vmem:[#allocation3 + $0x10] sm:$0xff] (!%p858_p7)  ;;  %v413_v4 = vmul.f32 (!%p858_p7), 0.0009765625, %v405_v3 }
  0xf9   : > { %388 = vst.msk [vmem:[#allocation3 + $0x30] sm:$0xff] %vm317_vm1, %v380_v1  ;;  %v412_v13 = vmul.f32 (!%p858_p7), 0.0009765625, %v404_v2  ;;  %966 = vmatpush3.bf16.msra.mxu1 (!%p858_p7), %v965_v21 }
  0xfa   : > { %967 = vmatprep.subr.bf16.mxu1 %v1193_v6  ;;  %917 = vmatmul.mubr.msk.f32.vlgmr.msra.gmra.mrb[0].mxu0 %vm427_vm3, %v418_v36 }
  0xfb   : > { %v407_v20 = vld [vmem:[#allocation3 + $0x28] sm:$0xff]  ;;  %v968_v23 = vpack.c.bf16 %v413_v4, %v412_v13  ;;  %940 = vmatprep.mubr.msk.f32.mxu0 %vm574_vm4, %v419_v37 }
  0xfc   : > { %v406_v19 = vld [vmem:[#allocation3 + $0x20] sm:$0xff]  ;;  %v415_v25 = vmul.f32 0.0009765625, %v407_v20 }
  0xfd   : > { %v414_v24 = vmul.f32 0.0009765625, %v406_v19  ;;  %969 = vmatpush3.bf16.msra.mxu1 %v968_v23 }
  0xfe   : > { %970 = vmatprep.subr.bf16.mxu1 %v1193_v6 }
  0xff   : > { %v409_v28 = vld [vmem:[#allocation3 + $0x38] sm:$0xff]  ;;  %v971_v31 = vpack.c.bf16 %v415_v25, %v414_v24 }
 0x100   : > { %v408_v27 = vld [vmem:[#allocation3 + $0x30] sm:$0xff]  ;;  %v417_v33 = vmul.f32 0.0009765625, %v409_v28 }
 0x101   : > { %v416_v32 = vmul.f32 0.0009765625, %v408_v27  ;;  %972 = vmatpush3.bf16.msra.mxu1 %v971_v31 }
 0x102   : > { %973 = vmatprep.subr.bf16.mxu1 %v1193_v6 }
 0x103   : > { %v974_v35 = vpack.c.bf16 %v417_v33, %v416_v32 }
 0x105   : > { %975 = vmatpush3.bf16.msra.mxu1 %v974_v35 }
 0x108   : > { %936 = vmatmul.mubr.msk.f32.vlgmr.msra.gmra.mrb[0].mxu1 %vm427_vm3, %v418_v36 }
 0x109   : > { %946 = vmatprep.mubr.msk.f32.mxu1 %vm574_vm4, %v423_v38 }
 0x1cd   : > { %v497_v39 = vpop.f32.mrb[0].mxu0 }
 0x1ce   : > { %v918_v40 = vpop.f32.mrb[1].mxu0  ;;  %v501_v41 = vmax.f32 %v497_v39, 0.0 }
 0x1db   : > { %v568_v42 = vpop.f32.mrb[0].mxu1 }
 0x1dc   : > { %v572_v43 = vmax.f32 %v568_v42, 0.0  ;;  %v937_v44 = vpop.f32.mrb[1].mxu1 }
 0x1de   : > { %v573_v45 = vadd.f32 %v572_v43, %v501_v41 }
 0x1e0   : > { %938 = vmatprep.subr.msk.mxu0 %vm599_vm5, %v573_v45  ;;  %976 = vmatprep.subr.msk.mxu1 %vm599_vm5, %v573_v45 }
 0x1e1   : > { %939 = vmatpush3.msk.msra.mxu0 %vm599_vm5, %v573_v45  ;;  %977 = vmatpush3.msk.msra.mxu1 %vm599_vm5, %v573_v45 }
 0x1e2   : > { %941 = vmatmul.mubr.msk.f32.vlgmr.msra.gmra.mrb[2].mxu0 %vm574_vm4, %v420_v46  ;;  %947 = vmatmul.mubr.msk.f32.vlgmr.msra.gmra.mrb[2].mxu1 %vm574_vm4, %v424_v47 }
 0x1e3   : > { %943 = vmatprep.mubr.msk.f32.mxu0 %vm574_vm4, %v421_v48  ;;  %949 = vmatprep.mubr.msk.f32.mxu1 %vm574_vm4, %v425_v49 }
 0x1e6   : > { %944 = vmatmul.mubr.msk.f32.gmra.mrb[4].mxu0 %vm574_vm4, %v422_v50  ;;  %950 = vmatmul.mubr.msk.f32.gmra.mrb[4].mxu1 %vm574_vm4, %v426_v51 }
 0x2b5   : > { %v942_v52 = vpop.f32.mrb[2].mxu0  ;;  %v948_v53 = vpop.f32.mrb[2].mxu1 }
 0x2b6   : > { %v709_v54 = vsub.f32 0.0, %v942_v52  ;;  %v713_v55 = vsub.f32 0.0, %v948_v53  ;;  %v669_v56 = vpop.f32.mrb[3].mxu0  ;;  %v689_v57 = vpop.f32.mrb[3].mxu1 }
 0x2b7   : > { %v708_v58 = vsub.f32 0.0, %v669_v56  ;;  %v712_v59 = vsub.f32 0.0, %v689_v57 }
 0x2b8   : > { %v718_v60 = vmul.f32 1.442695, %v709_v54  ;;  %v726_v61 = vmul.f32 1.442695, %v713_v55 }
 0x2b9   : > { %v716_v62 = vmul.f32 1.442695, %v708_v58  ;;  %v724_v63 = vmul.f32 1.442695, %v712_v59  ;;  %v945_v0 = vpop.f32.mrb[4].mxu0  ;;  %v951_v1 = vpop.f32.mrb[4].mxu1 }
 0x2ba   : > { %1057 = vpow2.f32 %v718_v60  ;;  %v711_v5 = vsub.f32 0.0, %v945_v0  ;;  %v715_v10 = vsub.f32 0.0, %v951_v1  ;;  %v679_v12 = vpop.f32.mrb[5].mxu0  ;;  %v699_v6 = vpop.f32.mrb[5].mxu1 }
 0x2bb   : > { %1059 = vpow2.f32 %v726_v61  ;;  %v710_v7 = vsub.f32 0.0, %v679_v12  ;;  %v714_v16 = vsub.f32 0.0, %v699_v6 }
 0x2bc   : > { %1061 = vpow2.f32 %v716_v62  ;;  %v722_v17 = vmul.f32 1.442695, %v711_v5  ;;  %v730_v11 = vmul.f32 1.442695, %v715_v10 }
 0x2bd   : > { %1063 = vpow2.f32 %v724_v63  ;;  %v720_v9 = vmul.f32 1.442695, %v710_v7  ;;  %v728_v14 = vmul.f32 1.442695, %v714_v16 }
 0x2be   : > { %1065 = vpow2.f32 %v722_v17 }
 0x2bf   : > { %1067 = vpow2.f32 %v730_v11 }
 0x2c0   : > { %1069 = vpow2.f32 %v720_v9 }
 0x2c1   : > { %1071 = vpow2.f32 %v728_v14 }
 0x2c4   : > { %v1058_v2 = vpop.eup %1057 }
 0x2c5   : > { %v1060_v3 = vpop.eup %1059  ;;  %v733_v15 = vadd.f32 1.0, %v1058_v2 }
 0x2c6   : > { %v1062_v18 = vpop.eup %1061  ;;  %v737_v13 = vadd.f32 1.0, %v1060_v3 }
 0x2c7   : > { %v1064_v4 = vpop.eup %1063  ;;  %1073 = vrcp.f32 %v733_v15  ;;  %v732_v19 = vadd.f32 1.0, %v1062_v18 }
 0x2c8   : > { %v1066_v20 = vpop.eup %1065  ;;  %1075 = vrcp.f32 %v737_v13  ;;  %v736_v21 = vadd.f32 1.0, %v1064_v4 }
 0x2c9   : > { %v1068_v22 = vpop.eup %1067  ;;  %1077 = vrcp.f32 %v732_v19  ;;  %v735_v8 = vadd.f32 1.0, %v1066_v20 }
 0x2ca   : > { %v1070_v23 = vpop.eup %1069  ;;  %1079 = vrcp.f32 %v736_v21  ;;  %v739_v24 = vadd.f32 1.0, %v1068_v22 }
 0x2cb   : > { %v1072_v25 = vpop.eup %1071  ;;  %1081 = vrcp.f32 %v735_v8  ;;  %v734_v26 = vadd.f32 1.0, %v1070_v23 }
 0x2cc   : > { %1083 = vrcp.f32 %v739_v24  ;;  %v738_v27 = vadd.f32 1.0, %v1072_v25 }
 0x2cd   : > { %1085 = vrcp.f32 %v734_v26 }
 0x2ce   : > { %1087 = vrcp.f32 %v738_v27 }
 0x2d1   : > { %v1074_v28 = vpop.eup %1073 }
 0x2d2   : > { %v1076_v29 = vpop.eup %1075  ;;  %757 = vst.msk [vmem:[%s1343_s24 + $0x8] sm:$0xff] %vm317_vm1, %v1074_v28 }
 0x2d3   : > { %v1078_v30 = vpop.eup %1077  ;;  %761 = vst.msk [vmem:[%s1343_s24 + $0x28] sm:$0xff] %vm317_vm1, %v1076_v29 }
 0x2d4   : > { %v1080_v31 = vpop.eup %1079  ;;  %756 = vst.msk [vmem:[%s1343_s24] sm:$0xff] %vm317_vm1, %v1078_v30 }
 0x2d5   : > { %v1082_v32 = vpop.eup %1081  ;;  %760 = vst.msk [vmem:[%s1343_s24 + $0x20] sm:$0xff] %vm317_vm1, %v1080_v31 }
 0x2d6   : > { %v1084_v33 = vpop.eup %1083  ;;  %759 = vst.msk [vmem:[%s1343_s24 + $0x18] sm:$0xff] %vm317_vm1, %v1082_v32 }
 0x2d7   : > { %v1086_v34 = vpop.eup %1085  ;;  %763 = vst.msk [vmem:[%s1343_s24 + $0x38] sm:$0xff] %vm317_vm1, %v1084_v33 }
 0x2d8   : > { %v1088_v35 = vpop.eup %1087  ;;  %758 = vst.msk [vmem:[%s1343_s24 + $0x10] sm:$0xff] %vm317_vm1, %v1086_v34 }
 0x2d9   : > { %762 = vst.msk [vmem:[%s1343_s24 + $0x30] sm:$0xff] %vm317_vm1, %v1088_v35 }
 0x2da PF: > { %s16_s19 = sadd.s32 1, %s1185_s19   ;;  %s1509_s12 = smov %s1161_s13 }
 0x2db   : > { %p13_p6 = scmp.ge.s32.totalorder %s16_s19, 6   ;;  %s1510_s13 = smov %s1165_s14 }
 0x2dc   : > { %s1511_s14 = smov %s1283_s5  ;;  %s1512_s15 = smov %s1177_s17 }
 0x2dd   : > { %s1513_s16 = smov %s1181_s18  ;;  %s1514_s17 = smov %s1517_s21 }
 0x2de   : > { %s1515_s18 = smov %s1521_s22  ;;  %15 = sbr.rel (!%p13_p6) target bundleno = 5 (0x5), region = 80 }
 0x2e5   :  { %785 = vsyncpa [#allocation5], 1 }
 0x2e6   :  { %787 = vsyncpa [#allocation5 + $0x1], 1 }

</bundles_post_ra>
